<compile_context>
chip_gen: v7x
topology: tpu7x:2x2x1
jax: 0.10.0
libtpu: 0.0.40
codegen_flags: <defaults>
</compile_context>

<pallas_src>
import functools

import jax
import jax.numpy as jnp
from jax.experimental import pallas as pl
from jax.experimental.pallas import tpu as pltpu

LANE = 128
MAX_BLOCK_R = 256    # rows per grid step (multiple of 8)
MAX_BLOCK_C = 1024   # cols per grid step (multiple of 128)


def _dice_sums_kernel(p_ref, t_ref, pt_out, p_out, t_out):
    """Accumulates lane-wise partial sums of p*t, p, t per row block."""
    j = pl.program_id(1)

    @pl.when(j == 0)
    def _():
        pt_out[...] = jnp.zeros_like(pt_out)
        p_out[...] = jnp.zeros_like(p_out)
        t_out[...] = jnp.zeros_like(t_out)

    block_r, block_c = p_ref.shape
    nchunks = block_c // LANE

    acc_pt = jnp.zeros((block_r, LANE), jnp.float32)
    acc_p = jnp.zeros((block_r, LANE), jnp.float32)
    acc_t = jnp.zeros((block_r, LANE), jnp.float32)
    # Static, lane-aligned slices: pure VPU adds, no XLU / relayout.
    for k in range(nchunks):
        p = p_ref[:, k * LANE:(k + 1) * LANE].astype(jnp.float32)
        t = t_ref[:, k * LANE:(k + 1) * LANE].astype(jnp.float32)
        acc_pt = acc_pt + p * t
        acc_p = acc_p + p
        acc_t = acc_t + t

    pt_out[...] += acc_pt
    p_out[...] += acc_p
    t_out[...] += acc_t


def _ceil_to(x, m):
    return -(-x // m) * m


@functools.partial(jax.jit, static_argnames=("classes_of_interest", "smooth"))
def multi_class_dice_loss(prediction, target, classes_of_interest=None, smooth=1.0):
    """Scalar multi-class Dice loss, matching the PyTorch MultiClassDiceLoss module."""
    assert prediction.shape == target.shape
    B, C = prediction.shape[0], prediction.shape[1]
    rows = B * C

    pred2 = prediction.reshape(rows, -1).astype(jnp.float32)
    tgt2 = target.reshape(rows, -1).astype(jnp.float32)
    cols = pred2.shape[1]

    # Tile sizes (clamped for small inputs, big for large ones).
    block_r = min(MAX_BLOCK_R, _ceil_to(rows, 8))
    rows_p = _ceil_to(rows, block_r)
    block_c = min(MAX_BLOCK_C, _ceil_to(cols, LANE))
    cols_p = _ceil_to(cols, block_c)

    # Zero padding contributes exactly 0 to all three sums.
    if rows_p != rows or cols_p != cols:
        pred2 = jnp.pad(pred2, ((0, rows_p - rows), (0, cols_p - cols)))
        tgt2 = jnp.pad(tgt2, ((0, rows_p - rows), (0, cols_p - cols)))

    grid = (rows_p // block_r, cols_p // block_c)
    out_sd = jax.ShapeDtypeStruct((rows_p, LANE), jnp.float32)
    out_spec = pl.BlockSpec((block_r, LANE), lambda i, j: (i, 0))

    n = rows_p * cols_p
    cost = pl.CostEstimate(
        flops=4 * n,
        transcendentals=0,
        bytes_accessed=2 * n * 4 + 3 * rows_p * LANE * 4,
    )

    pt_s, p_s, t_s = pl.pallas_call(
        _dice_sums_kernel,
        out_shape=(out_sd, out_sd, out_sd),
        grid=grid,
        in_specs=[
            pl.BlockSpec((block_r, block_c), lambda i, j: (i, j)),
            pl.BlockSpec((block_r, block_c), lambda i, j: (i, j)),
        ],
        out_specs=(out_spec, out_spec, out_spec),
        compiler_params=pltpu.CompilerParams(
            dimension_semantics=("parallel", "arbitrary")),
        cost_estimate=cost,
    )(pred2, tgt2)

    # Tiny epilogue in plain JAX: fold 128 lanes, fold batch, per-class dice.
    pt_c = pt_s[:rows].sum(axis=1).reshape(B, C).sum(axis=0)
    p_c = p_s[:rows].sum(axis=1).reshape(B, C).sum(axis=0)
    t_c = t_s[:rows].sum(axis=1).reshape(B, C).sum(axis=0)

    if classes_of_interest is None:
        classes = tuple(range(C))
    else:
        classes = tuple(classes_of_interest)
    idx = jnp.array(classes, dtype=jnp.int32)

    dice = -(2.0 * pt_c[idx] + smooth) / (p_c[idx] + t_c[idx] + smooth)
    return jnp.sum(dice) / len(classes)


def _reference(prediction, target, classes_of_interest=None, smooth=1.0):
    """Pure-JAX reference mirroring the PyTorch forward."""
    prediction = prediction.astype(jnp.float32)
    target = target.astype(jnp.float32)
    n_classes = prediction.shape[1]
    if classes_of_interest is None:
        classes_of_interest = list(range(n_classes))
    total = jnp.float32(0.0)
    for i in classes_of_interest:
        p = prediction[:, i].reshape(-1)
        t = target[:, i].reshape(-1)
        inter = jnp.sum(p * t)
        total = total + (-(2.0 * inter + smooth) / (jnp.sum(p) + jnp.sum(t) + smooth))
    return total / len(classes_of_interest)


if __name__ == "__main__":
    key = jax.random.PRNGKey(0)
    k_p, k_t = jax.random.split(key)
    # prediction: probability-like maps; target: binary-ish masks, NCHW
    pred = jax.random.uniform(k_p, (2, 4, 16, 16), dtype=jnp.float32)
    tgt = (jax.random.uniform(k_t, (2, 4, 16, 16), dtype=jnp.float32) > 0.5).astype(jnp.float32)

    loss = jax.block_until_ready(multi_class_dice_loss(pred, tgt))
    ref = jax.block_until_ready(_reference(pred, tgt))
    assert jnp.allclose(loss, ref, rtol=1e-5, atol=1e-5), (loss, ref)

    # also check the classes_of_interest path
    loss_sub = jax.block_until_ready(multi_class_dice_loss(pred, tgt, classes_of_interest=(0, 2)))
    ref_sub = jax.block_until_ready(_reference(pred, tgt, classes_of_interest=[0, 2]))
    assert jnp.allclose(loss_sub, ref_sub, rtol=1e-5, atol=1e-5), (loss_sub, ref_sub)

    print("KERNEL_OK")
</pallas_src>

<mosaic_0001>
module attributes {stable_mosaic.version = 11 : i64} {
  func.func @_dice_sums_kernel(%arg0: i32, %arg1: i32, %arg2: memref<8x256xf32, #tpu.memory_space<vmem>>, %arg3: memref<8x256xf32, #tpu.memory_space<vmem>>, %arg4: memref<8x128xf32, #tpu.memory_space<vmem>>, %arg5: memref<8x128xf32, #tpu.memory_space<vmem>>, %arg6: memref<8x128xf32, #tpu.memory_space<vmem>>) attributes {dimension_semantics = [#tpu.dimension_semantics<parallel>, #tpu.dimension_semantics<arbitrary>], iteration_bounds = array<i64: 1, 1>, scalar_prefetch = 0 : i64, scratch_operands = 0 : i64, tpu.core_type = #tpu.core_type<tc>, window_params = [{transform_indices = @transform_0, window_bounds = array<i64: 8, 256>}, {transform_indices = @transform_1, window_bounds = array<i64: 8, 256>}, {transform_indices = @transform_2, window_bounds = array<i64: 8, 128>}, {transform_indices = @transform_3, window_bounds = array<i64: 8, 128>}, {transform_indices = @transform_4, window_bounds = array<i64: 8, 128>}]} {
    %c0_i32 = arith.constant 0 : i32
    %0 = arith.cmpi eq, %arg1, %c0_i32 : i32
    %1 = arith.extui %0 : i1 to i32
    %c0_i32_0 = arith.constant 0 : i32
    %2 = arith.cmpi ne, %1, %c0_i32_0 : i32
    scf.if %2 {
      %cst_21 = arith.constant 0.000000e+00 : f32
      %27 = vector.broadcast %cst_21 : f32 to vector<8x128xf32>
      %c0_22 = arith.constant 0 : index
      %c0_23 = arith.constant 0 : index
      %28 = vector.load %arg4[%c0_22, %c0_23] : memref<8x128xf32, #tpu.memory_space<vmem>>, vector<8x128xf32>
      tpu.vector_store %arg4[%c0_22, %c0_23], %27 {strides = array<i32>} : memref<8x128xf32, #tpu.memory_space<vmem>>, vector<8x128xf32>,
      %cst_24 = arith.constant 0.000000e+00 : f32
      %29 = vector.broadcast %cst_24 : f32 to vector<8x128xf32>
      %c0_25 = arith.constant 0 : index
      %c0_26 = arith.constant 0 : index
      %30 = vector.load %arg5[%c0_25, %c0_26] : memref<8x128xf32, #tpu.memory_space<vmem>>, vector<8x128xf32>
      tpu.vector_store %arg5[%c0_25, %c0_26], %29 {strides = array<i32>} : memref<8x128xf32, #tpu.memory_space<vmem>>, vector<8x128xf32>,
      %cst_27 = arith.constant 0.000000e+00 : f32
      %31 = vector.broadcast %cst_27 : f32 to vector<8x128xf32>
      %c0_28 = arith.constant 0 : index
      %c0_29 = arith.constant 0 : index
      %32 = vector.load %arg6[%c0_28, %c0_29] : memref<8x128xf32, #tpu.memory_space<vmem>>, vector<8x128xf32>
      tpu.vector_store %arg6[%c0_28, %c0_29], %31 {strides = array<i32>} : memref<8x128xf32, #tpu.memory_space<vmem>>, vector<8x128xf32>,
    } else {
    }
    %cst = arith.constant 0.000000e+00 : f32
    %3 = vector.broadcast %cst : f32 to vector<8x128xf32>
    %cst_1 = arith.constant 0.000000e+00 : f32
    %4 = vector.broadcast %cst_1 : f32 to vector<8x128xf32>
    %cst_2 = arith.constant 0.000000e+00 : f32
    %5 = vector.broadcast %cst_2 : f32 to vector<8x128xf32>
    %c0 = arith.constant 0 : index
    %c0_3 = arith.constant 0 : index
    %6 = vector.load %arg2[%c0, %c0_3] : memref<8x256xf32, #tpu.memory_space<vmem>>, vector<8x128xf32>
    %c0_4 = arith.constant 0 : index
    %c0_5 = arith.constant 0 : index
    %7 = vector.load %arg3[%c0_4, %c0_5] : memref<8x256xf32, #tpu.memory_space<vmem>>, vector<8x128xf32>
    %8 = arith.mulf %6, %7 : vector<8x128xf32>
    %9 = arith.addf %3, %8 : vector<8x128xf32>
    %10 = arith.addf %4, %6 : vector<8x128xf32>
    %11 = arith.addf %5, %7 : vector<8x128xf32>
    %c0_6 = arith.constant 0 : index
    %c128 = arith.constant 128 : index
    %12 = vector.load %arg2[%c0_6, %c128] : memref<8x256xf32, #tpu.memory_space<vmem>>, vector<8x128xf32>
    %c0_7 = arith.constant 0 : index
    %c128_8 = arith.constant 128 : index
    %13 = vector.load %arg3[%c0_7, %c128_8] : memref<8x256xf32, #tpu.memory_space<vmem>>, vector<8x128xf32>
    %14 = arith.mulf %12, %13 : vector<8x128xf32>
    %15 = arith.addf %9, %14 : vector<8x128xf32>
    %16 = arith.addf %10, %12 : vector<8x128xf32>
    %17 = arith.addf %11, %13 : vector<8x128xf32>
    %c0_9 = arith.constant 0 : index
    %c0_10 = arith.constant 0 : index
    %18 = vector.load %arg4[%c0_9, %c0_10] : memref<8x128xf32, #tpu.memory_space<vmem>>, vector<8x128xf32>
    %19 = arith.addf %18, %15 : vector<8x128xf32>
    %c0_11 = arith.constant 0 : index
    %c0_12 = arith.constant 0 : index
    %20 = vector.load %arg4[%c0_11, %c0_12] : memref<8x128xf32, #tpu.memory_space<vmem>>, vector<8x128xf32>
    tpu.vector_store %arg4[%c0_11, %c0_12], %19 {strides = array<i32>} : memref<8x128xf32, #tpu.memory_space<vmem>>, vector<8x128xf32>,
    %c0_13 = arith.constant 0 : index
    %c0_14 = arith.constant 0 : index
    %21 = vector.load %arg5[%c0_13, %c0_14] : memref<8x128xf32, #tpu.memory_space<vmem>>, vector<8x128xf32>
    %22 = arith.addf %21, %16 : vector<8x128xf32>
    %c0_15 = arith.constant 0 : index
    %c0_16 = arith.constant 0 : index
    %23 = vector.load %arg5[%c0_15, %c0_16] : memref<8x128xf32, #tpu.memory_space<vmem>>, vector<8x128xf32>
    tpu.vector_store %arg5[%c0_15, %c0_16], %22 {strides = array<i32>} : memref<8x128xf32, #tpu.memory_space<vmem>>, vector<8x128xf32>,
    %c0_17 = arith.constant 0 : index
    %c0_18 = arith.constant 0 : index
    %24 = vector.load %arg6[%c0_17, %c0_18] : memref<8x128xf32, #tpu.memory_space<vmem>>, vector<8x128xf32>
    %25 = arith.addf %24, %17 : vector<8x128xf32>
    %c0_19 = arith.constant 0 : index
    %c0_20 = arith.constant 0 : index
    %26 = vector.load %arg6[%c0_19, %c0_20] : memref<8x128xf32, #tpu.memory_space<vmem>>, vector<8x128xf32>
    tpu.vector_store %arg6[%c0_19, %c0_20], %25 {strides = array<i32>} : memref<8x128xf32, #tpu.memory_space<vmem>>, vector<8x128xf32>,
    return
  }
  func.func @transform_0(%arg0: i32, %arg1: i32) -> (i32, i32) {
    %c0_i32 = arith.constant 0 : i32
    return %arg0, %arg1 : i32, i32
  }
  func.func @transform_1(%arg0: i32, %arg1: i32) -> (i32, i32) {
    %c0_i32 = arith.constant 0 : i32
    return %arg0, %arg1 : i32, i32
  }
  func.func @transform_2(%arg0: i32, %arg1: i32) -> (i32, i32) {
    %c0_i32 = arith.constant 0 : i32
    %c0_i32_0 = arith.constant 0 : i32
    return %arg0, %c0_i32 : i32, i32
  }
  func.func @transform_3(%arg0: i32, %arg1: i32) -> (i32, i32) {
    %c0_i32 = arith.constant 0 : i32
    %c0_i32_0 = arith.constant 0 : i32
    return %arg0, %c0_i32 : i32, i32
  }
  func.func @transform_4(%arg0: i32, %arg1: i32) -> (i32, i32) {
    %c0_i32 = arith.constant 0 : i32
    %c0_i32_0 = arith.constant 0 : i32
    return %arg0, %c0_i32 : i32, i32
  }
}

</mosaic_0001>

<bundles_post_ra>
// kernel: multi_class_dice_loss.1
= control target key start
LH: loop header
LB: loop body
LE: loop exit
PB: predicated region body
PF: predicated region fallthrough
CT: control target
= control target key end

     0   :  { %s101_s0 = inlined_call_operand.vmem [shape: f32[8,256], index: 0, kind: input, shape index: {}]   ;;  %s102_s1 = inlined_call_operand.vmem [shape: f32[8,256], index: 1, kind: input, shape index: {}]   ;;  %s103_s3 = inlined_call_operand.vmem [shape: f32[8,128], index: 3, kind: output, shape index: {1}]   ;;  %s104_s4 = inlined_call_operand.vmem [shape: f32[8,128], index: 4, kind: output, shape index: {2}]   ;;  %s105_s2 = inlined_call_operand.vmem [shape: f32[8,128], index: 2, kind: output, shape index: {0}]  }
   0x1   :  { %v21_v0 = vld [vmem:[%s101_s0] sm:$0xff]  ;;  %v27_v2 = vld [vmem:[%s101_s0 + $0x8] sm:$0xff] }
   0x2   :  { %v22_v1 = vld [vmem:[%s102_s1] sm:$0xff]  ;;  %v28_v4 = vld [vmem:[%s102_s1 + $0x8] sm:$0xff]  ;;  %v31_v5 = vadd.f32 %v27_v2, %v21_v0 }
   0x3   :  { %v23_v3 = vmul.f32 %v22_v1, %v21_v0  ;;  %v29_v6 = vmul.f32 %v28_v4, %v27_v2  ;;  %v32_v7 = vadd.f32 %v28_v4, %v22_v1 }
   0x4   :  { %38 = vst [vmem:[%s103_s3] sm:$0xff] %v31_v5 }
   0x5   :  { %v30_v8 = vadd.f32 %v29_v6, %v23_v3  ;;  %41 = vst [vmem:[%s104_s4] sm:$0xff] %v32_v7 }
   0x7   :  { %35 = vst [vmem:[%s105_s2] sm:$0xff] %v30_v8 }

</bundles_post_ra>
